<compile_context>
chip_gen: v7x
topology: tpu7x:2x2x1
jax: 0.10.0
libtpu: 0.0.40
codegen_flags: <defaults>
</compile_context>

<pallas_src>
import functools

import jax
import jax.numpy as jnp
from jax.experimental import pallas as pl
from jax.experimental.pallas import tpu as pltpu


def lstm_model_kernel(x_ref, wih_ref, whh_ref, b_ref,
                      wfc_ref, bfc_ref, alpha_ref, wfc2_ref, bfc2_ref,
                      o_ref, *, seq_len, batch, hidden):
    T, Bp, H = seq_len, batch, hidden

    # Input projection for ALL time steps in one bf16 MXU matmul (f32 acc);
    # combined bias hoisted out of the recurrence and added once here.
    xg = (jnp.dot(x_ref[...], wih_ref[...], preferred_element_type=jnp.float32)
          + b_ref[...])                                       # (T*Bp, 4H) f32

    whh = whh_ref[...]                                        # (H, 4H) bf16

    h = jnp.zeros((Bp, H), jnp.float32)
    c = jnp.zeros((Bp, H), jnp.float32)

    # T is small & static: fully unrolled recurrence, one MXU push per step
    # (only h @ W_hh remains on the serialized critical path).
    for t in range(T):
        gates = xg[t * Bp:(t + 1) * Bp, :] + jnp.dot(
            h.astype(jnp.bfloat16), whh,
            preferred_element_type=jnp.float32)               # (Bp, 4H) f32

        # sigmoid(x) == 0.5*tanh(0.5*x)+0.5 : one EUP pass for the three
        # sigmoid gates (i, f, o) instead of exp + reciprocal.
        sig = 0.5 * jnp.tanh(0.5 * gates) + 0.5
        i_g = sig[:, 0 * H:1 * H]
        f_g = sig[:, 1 * H:2 * H]
        o_g = sig[:, 3 * H:4 * H]
        g_g = jnp.tanh(gates[:, 2 * H:3 * H])                 # tanh on H lanes only

        c = f_g * c + i_g * g_g
        h = o_g * jnp.tanh(c)

    # Head on the last hidden state: fc -> PReLU -> fc2 -> sigmoid.
    fc = (jnp.dot(h.astype(jnp.bfloat16), wfc_ref[...],
                  preferred_element_type=jnp.float32) + bfc_ref[...])
    a = alpha_ref[0, 0]                                       # scalar from SMEM
    pr = jnp.where(fc >= 0, fc, a * fc)                       # PReLU (1 param)
    fc2 = (jnp.dot(pr.astype(jnp.bfloat16), wfc2_ref[...],
                   preferred_element_type=jnp.float32) + bfc2_ref[...])
    o_ref[...] = 0.5 * jnp.tanh(0.5 * fc2) + 0.5              # sigmoid


@jax.jit
def lstm_model_forward(x, params):
    """x: (B, T, I) float32 (batch_first, like PyTorch). Returns (B, O)."""
    B, T, I = x.shape
    H = params["w_hh"].shape[0]
    O = params["w_fc2"].shape[1]

    # bf16 MXU operands (f32 accumulation inside the kernel); biases stay f32.
    wih = params["w_ih"].astype(jnp.bfloat16)
    whh = params["w_hh"].astype(jnp.bfloat16)
    wfc = params["w_fc"].astype(jnp.bfloat16)
    wfc2 = params["w_fc2"].astype(jnp.bfloat16)
    b, bfc, bfc2, alpha = (params["b"], params["b_fc"],
                           params["b_fc2"], params["alpha"])

    # Pad batch up to a full sublane group (multiple of 8) -> unmasked vector
    # ops; padded rows are dropped at the end.  Everything here fuses under
    # the enclosing jit (no extra dispatches).
    Bp = max(8, ((B + 7) // 8) * 8)
    x_tm = jnp.transpose(x, (1, 0, 2))                        # (T, B, I) time-major
    x_tm = jnp.pad(x_tm, ((0, 0), (0, Bp - B), (0, 0)))       # (T, Bp, I)
    x_flat = x_tm.reshape(T * Bp, I).astype(jnp.bfloat16)     # (T*Bp, I)

    kernel = functools.partial(
        lstm_model_kernel, seq_len=T, batch=Bp, hidden=H)

    vmem = pl.BlockSpec(memory_space=pltpu.MemorySpace.VMEM)
    smem = pl.BlockSpec(memory_space=pltpu.MemorySpace.SMEM)

    out = pl.pallas_call(
        kernel,
        out_shape=jax.ShapeDtypeStruct((Bp, O), jnp.float32),
        in_specs=[
            vmem,   # x_flat        (T*Bp, I)  bf16
            vmem,   # W_ih^T        (I, 4H)    bf16
            vmem,   # W_hh^T        (H, 4H)    bf16
            vmem,   # combined bias (1, 4H)    f32
            vmem,   # W_fc^T        (H, F)     bf16
            vmem,   # b_fc          (1, F)     f32
            smem,   # PReLU alpha   (1, 1)     f32 scalar
            vmem,   # W_fc2^T       (F, O)     bf16
            vmem,   # b_fc2         (1, O)     f32
        ],
        out_specs=pl.BlockSpec(memory_space=pltpu.MemorySpace.VMEM),
    )(x_flat, wih, whh, b, wfc, bfc, alpha, wfc2, bfc2)

    return out[:B]                                            # drop padded rows


def init_params(key, input_size, lstm_size, fc_size, output_size):
    ks = jax.random.split(key, 9)
    scale = 0.1
    # PyTorch shapes: weight_ih_l0 (4H, I), weight_hh_l0 (4H, H),
    # bias_ih_l0 (4H,), bias_hh_l0 (4H,).  Stored here pre-transposed.
    w_ih = jax.random.normal(ks[0], (4 * lstm_size, input_size), jnp.float32) * scale
    w_hh = jax.random.normal(ks[1], (4 * lstm_size, lstm_size), jnp.float32) * scale
    b_ih = jax.random.normal(ks[2], (4 * lstm_size,), jnp.float32) * scale
    b_hh = jax.random.normal(ks[3], (4 * lstm_size,), jnp.float32) * scale
    w_fc = jax.random.normal(ks[4], (fc_size, lstm_size), jnp.float32) * scale
    b_fc = jax.random.normal(ks[5], (fc_size,), jnp.float32) * scale
    w_fc2 = jax.random.normal(ks[6], (output_size, fc_size), jnp.float32) * scale
    b_fc2 = jax.random.normal(ks[7], (output_size,), jnp.float32) * scale
    alpha = jnp.full((1, 1), 0.25, jnp.float32)   # nn.PReLU() default init
    return {
        "w_ih": w_ih.T,                            # (I, 4H)
        "w_hh": w_hh.T,                            # (H, 4H)
        "b": (b_ih + b_hh)[None, :],               # (1, 4H)
        "w_fc": w_fc.T,                            # (H, F)
        "b_fc": b_fc[None, :],                     # (1, F)
        "alpha": alpha,                            # (1, 1)
        "w_fc2": w_fc2.T,                          # (F, O)
        "b_fc2": b_fc2[None, :],                   # (1, O)
    }


def reference_forward(x, params):
    """Pure-JAX f32 reference (matches the PyTorch module) for correctness."""
    B, T, I = x.shape
    H = params["w_hh"].shape[0]
    h = jnp.zeros((B, H), jnp.float32)
    c = jnp.zeros((B, H), jnp.float32)
    for t in range(T):
        gates = x[:, t, :] @ params["w_ih"] + h @ params["w_hh"] + params["b"]
        i_g = jax.nn.sigmoid(gates[:, 0 * H:1 * H])
        f_g = jax.nn.sigmoid(gates[:, 1 * H:2 * H])
        g_g = jnp.tanh(gates[:, 2 * H:3 * H])
        o_g = jax.nn.sigmoid(gates[:, 3 * H:4 * H])
        c = f_g * c + i_g * g_g
        h = o_g * jnp.tanh(c)
    fc = h @ params["w_fc"] + params["b_fc"]
    a = params["alpha"][0, 0]
    pr = jnp.where(fc >= 0, fc, a * fc)
    return jax.nn.sigmoid(pr @ params["w_fc2"] + params["b_fc2"])


if __name__ == "__main__":
    # Small shapes consistent with the module's forward:
    # x: (batch=2, seq=8, input_size=16); lstm_size=32, fc_size=32, output_size=8
    B, T, I = 2, 8, 16
    H, F, O = 32, 32, 8

    key = jax.random.PRNGKey(0)
    kx, kp = jax.random.split(key)
    x = jax.random.normal(kx, (B, T, I), jnp.float32)
    params = init_params(kp, I, H, F, O)

    y = lstm_model_forward(x, params)
    y = jax.block_until_ready(y)

    y_ref = reference_forward(x, params)
    assert y.shape == (B, O)
    # bf16 MXU operands (f32 accumulation) -> relaxed tolerance vs f32 reference.
    assert jnp.allclose(y, y_ref, atol=2e-2, rtol=2e-2)

    print("KERNEL_OK")
</pallas_src>

<mosaic_0001>
module attributes {stable_mosaic.version = 11 : i64} {
  func.func @lstm_model_kernel(%arg0: memref<64x16xbf16, #tpu.memory_space<vmem>>, %arg1: memref<16x128xbf16, #tpu.memory_space<vmem>>, %arg2: memref<32x128xbf16, #tpu.memory_space<vmem>>, %arg3: memref<1x128xf32, #tpu.memory_space<vmem>>, %arg4: memref<32x32xbf16, #tpu.memory_space<vmem>>, %arg5: memref<1x32xf32, #tpu.memory_space<vmem>>, %arg6: memref<1x1xf32, #tpu.memory_space<smem>>, %arg7: memref<32x8xbf16, #tpu.memory_space<vmem>>, %arg8: memref<1x8xf32, #tpu.memory_space<vmem>>, %arg9: memref<8x8xf32, #tpu.memory_space<vmem>>) attributes {dimension_semantics = [], scalar_prefetch = 0 : i64, scratch_operands = 0 : i64, tpu.core_type = #tpu.core_type<tc>} {
    %c0 = arith.constant 0 : index
    %c0_0 = arith.constant 0 : index
    %0 = vector.load %arg0[%c0, %c0_0] : memref<64x16xbf16, #tpu.memory_space<vmem>>, vector<64x16xbf16>
    %c0_1 = arith.constant 0 : index
    %c0_2 = arith.constant 0 : index
    %1 = vector.load %arg1[%c0_1, %c0_2] : memref<16x128xbf16, #tpu.memory_space<vmem>>, vector<16x128xbf16>
    %cst = arith.constant dense<0.000000e+00> : vector<64x128xf32>
    %2 = tpu.matmul %0, %1, %cst {dimension_numbers = #tpu.dot_dimension_numbers<[1], [0], [0], [1], [0, 0, 1, 1], [], []>} : vector<64x16xbf16>, vector<16x128xbf16>, vector<64x128xf32> -> vector<64x128xf32>
    %c0_3 = arith.constant 0 : index
    %c0_4 = arith.constant 0 : index
    %3 = vector.load %arg3[%c0_3, %c0_4] : memref<1x128xf32, #tpu.memory_space<vmem>>, vector<1x128xf32>
    %4 = vector.broadcast %3 : vector<1x128xf32> to vector<64x128xf32>
    %5 = arith.addf %2, %4 : vector<64x128xf32>
    %c0_5 = arith.constant 0 : index
    %c0_6 = arith.constant 0 : index
    %6 = vector.load %arg2[%c0_5, %c0_6] : memref<32x128xbf16, #tpu.memory_space<vmem>>, vector<32x128xbf16>
    %cst_7 = arith.constant 0.000000e+00 : f32
    %7 = vector.broadcast %cst_7 : f32 to vector<8x32xf32>
    %cst_8 = arith.constant 0.000000e+00 : f32
    %8 = vector.broadcast %cst_8 : f32 to vector<8x32xf32>
    %9 = vector.extract_strided_slice %5 {offsets = [0, 0], sizes = [8, 128], strides = [1, 1]} : vector<64x128xf32> to vector<8x128xf32>
    %10 = arith.truncf %7 : vector<8x32xf32> to vector<8x32xbf16>
    %cst_9 = arith.constant dense<0.000000e+00> : vector<8x128xf32>
    %11 = tpu.matmul %10, %6, %cst_9 {dimension_numbers = #tpu.dot_dimension_numbers<[1], [0], [0], [1], [0, 0, 1, 1], [], []>} : vector<8x32xbf16>, vector<32x128xbf16>, vector<8x128xf32> -> vector<8x128xf32>
    %12 = arith.addf %9, %11 : vector<8x128xf32>
    %cst_10 = arith.constant 5.000000e-01 : f32
    %13 = vector.broadcast %cst_10 : f32 to vector<8x128xf32>
    %14 = arith.mulf %13, %12 : vector<8x128xf32>
    %15 = math.tanh %14 : vector<8x128xf32>
    %cst_11 = arith.constant 5.000000e-01 : f32
    %16 = vector.broadcast %cst_11 : f32 to vector<8x128xf32>
    %17 = arith.mulf %16, %15 : vector<8x128xf32>
    %cst_12 = arith.constant 5.000000e-01 : f32
    %18 = vector.broadcast %cst_12 : f32 to vector<8x128xf32>
    %19 = arith.addf %17, %18 : vector<8x128xf32>
    %20 = vector.extract_strided_slice %19 {offsets = [0, 0], sizes = [8, 32], strides = [1, 1]} : vector<8x128xf32> to vector<8x32xf32>
    %21 = vector.extract_strided_slice %19 {offsets = [0, 32], sizes = [8, 32], strides = [1, 1]} : vector<8x128xf32> to vector<8x32xf32>
    %22 = vector.extract_strided_slice %19 {offsets = [0, 96], sizes = [8, 32], strides = [1, 1]} : vector<8x128xf32> to vector<8x32xf32>
    %23 = vector.extract_strided_slice %12 {offsets = [0, 64], sizes = [8, 32], strides = [1, 1]} : vector<8x128xf32> to vector<8x32xf32>
    %24 = math.tanh %23 : vector<8x32xf32>
    %25 = arith.mulf %21, %8 : vector<8x32xf32>
    %26 = arith.mulf %20, %24 : vector<8x32xf32>
    %27 = arith.addf %25, %26 : vector<8x32xf32>
    %28 = math.tanh %27 : vector<8x32xf32>
    %29 = arith.mulf %22, %28 : vector<8x32xf32>
    %30 = vector.extract_strided_slice %5 {offsets = [8, 0], sizes = [8, 128], strides = [1, 1]} : vector<64x128xf32> to vector<8x128xf32>
    %31 = arith.truncf %29 : vector<8x32xf32> to vector<8x32xbf16>
    %cst_13 = arith.constant dense<0.000000e+00> : vector<8x128xf32>
    %32 = tpu.matmul %31, %6, %cst_13 {dimension_numbers = #tpu.dot_dimension_numbers<[1], [0], [0], [1], [0, 0, 1, 1], [], []>} : vector<8x32xbf16>, vector<32x128xbf16>, vector<8x128xf32> -> vector<8x128xf32>
    %33 = arith.addf %30, %32 : vector<8x128xf32>
    %cst_14 = arith.constant 5.000000e-01 : f32
    %34 = vector.broadcast %cst_14 : f32 to vector<8x128xf32>
    %35 = arith.mulf %34, %33 : vector<8x128xf32>
    %36 = math.tanh %35 : vector<8x128xf32>
    %cst_15 = arith.constant 5.000000e-01 : f32
    %37 = vector.broadcast %cst_15 : f32 to vector<8x128xf32>
    %38 = arith.mulf %37, %36 : vector<8x128xf32>
    %cst_16 = arith.constant 5.000000e-01 : f32
    %39 = vector.broadcast %cst_16 : f32 to vector<8x128xf32>
    %40 = arith.addf %38, %39 : vector<8x128xf32>
    %41 = vector.extract_strided_slice %40 {offsets = [0, 0], sizes = [8, 32], strides = [1, 1]} : vector<8x128xf32> to vector<8x32xf32>
    %42 = vector.extract_strided_slice %40 {offsets = [0, 32], sizes = [8, 32], strides = [1, 1]} : vector<8x128xf32> to vector<8x32xf32>
    %43 = vector.extract_strided_slice %40 {offsets = [0, 96], sizes = [8, 32], strides = [1, 1]} : vector<8x128xf32> to vector<8x32xf32>
    %44 = vector.extract_strided_slice %33 {offsets = [0, 64], sizes = [8, 32], strides = [1, 1]} : vector<8x128xf32> to vector<8x32xf32>
    %45 = math.tanh %44 : vector<8x32xf32>
    %46 = arith.mulf %42, %27 : vector<8x32xf32>
    %47 = arith.mulf %41, %45 : vector<8x32xf32>
    %48 = arith.addf %46, %47 : vector<8x32xf32>
    %49 = math.tanh %48 : vector<8x32xf32>
    %50 = arith.mulf %43, %49 : vector<8x32xf32>
    %51 = vector.extract_strided_slice %5 {offsets = [16, 0], sizes = [8, 128], strides = [1, 1]} : vector<64x128xf32> to vector<8x128xf32>
    %52 = arith.truncf %50 : vector<8x32xf32> to vector<8x32xbf16>
    %cst_17 = arith.constant dense<0.000000e+00> : vector<8x128xf32>
    %53 = tpu.matmul %52, %6, %cst_17 {dimension_numbers = #tpu.dot_dimension_numbers<[1], [0], [0], [1], [0, 0, 1, 1], [], []>} : vector<8x32xbf16>, vector<32x128xbf16>, vector<8x128xf32> -> vector<8x128xf32>
    %54 = arith.addf %51, %53 : vector<8x128xf32>
    %cst_18 = arith.constant 5.000000e-01 : f32
    %55 = vector.broadcast %cst_18 : f32 to vector<8x128xf32>
    %56 = arith.mulf %55, %54 : vector<8x128xf32>
    %57 = math.tanh %56 : vector<8x128xf32>
    %cst_19 = arith.constant 5.000000e-01 : f32
    %58 = vector.broadcast %cst_19 : f32 to vector<8x128xf32>
    %59 = arith.mulf %58, %57 : vector<8x128xf32>
    %cst_20 = arith.constant 5.000000e-01 : f32
    %60 = vector.broadcast %cst_20 : f32 to vector<8x128xf32>
    %61 = arith.addf %59, %60 : vector<8x128xf32>
    %62 = vector.extract_strided_slice %61 {offsets = [0, 0], sizes = [8, 32], strides = [1, 1]} : vector<8x128xf32> to vector<8x32xf32>
    %63 = vector.extract_strided_slice %61 {offsets = [0, 32], sizes = [8, 32], strides = [1, 1]} : vector<8x128xf32> to vector<8x32xf32>
    %64 = vector.extract_strided_slice %61 {offsets = [0, 96], sizes = [8, 32], strides = [1, 1]} : vector<8x128xf32> to vector<8x32xf32>
    %65 = vector.extract_strided_slice %54 {offsets = [0, 64], sizes = [8, 32], strides = [1, 1]} : vector<8x128xf32> to vector<8x32xf32>
    %66 = math.tanh %65 : vector<8x32xf32>
    %67 = arith.mulf %63, %48 : vector<8x32xf32>
    %68 = arith.mulf %62, %66 : vector<8x32xf32>
    %69 = arith.addf %67, %68 : vector<8x32xf32>
    %70 = math.tanh %69 : vector<8x32xf32>
    %71 = arith.mulf %64, %70 : vector<8x32xf32>
    %72 = vector.extract_strided_slice %5 {offsets = [24, 0], sizes = [8, 128], strides = [1, 1]} : vector<64x128xf32> to vector<8x128xf32>
    %73 = arith.truncf %71 : vector<8x32xf32> to vector<8x32xbf16>
    %cst_21 = arith.constant dense<0.000000e+00> : vector<8x128xf32>
    %74 = tpu.matmul %73, %6, %cst_21 {dimension_numbers = #tpu.dot_dimension_numbers<[1], [0], [0], [1], [0, 0, 1, 1], [], []>} : vector<8x32xbf16>, vector<32x128xbf16>, vector<8x128xf32> -> vector<8x128xf32>
    %75 = arith.addf %72, %74 : vector<8x128xf32>
    %cst_22 = arith.constant 5.000000e-01 : f32
    %76 = vector.broadcast %cst_22 : f32 to vector<8x128xf32>
    %77 = arith.mulf %76, %75 : vector<8x128xf32>
    %78 = math.tanh %77 : vector<8x128xf32>
    %cst_23 = arith.constant 5.000000e-01 : f32
    %79 = vector.broadcast %cst_23 : f32 to vector<8x128xf32>
    %80 = arith.mulf %79, %78 : vector<8x128xf32>
    %cst_24 = arith.constant 5.000000e-01 : f32
    %81 = vector.broadcast %cst_24 : f32 to vector<8x128xf32>
    %82 = arith.addf %80, %81 : vector<8x128xf32>
    %83 = vector.extract_strided_slice %82 {offsets = [0, 0], sizes = [8, 32], strides = [1, 1]} : vector<8x128xf32> to vector<8x32xf32>
    %84 = vector.extract_strided_slice %82 {offsets = [0, 32], sizes = [8, 32], strides = [1, 1]} : vector<8x128xf32> to vector<8x32xf32>
    %85 = vector.extract_strided_slice %82 {offsets = [0, 96], sizes = [8, 32], strides = [1, 1]} : vector<8x128xf32> to vector<8x32xf32>
    %86 = vector.extract_strided_slice %75 {offsets = [0, 64], sizes = [8, 32], strides = [1, 1]} : vector<8x128xf32> to vector<8x32xf32>
    %87 = math.tanh %86 : vector<8x32xf32>
    %88 = arith.mulf %84, %69 : vector<8x32xf32>
    %89 = arith.mulf %83, %87 : vector<8x32xf32>
    %90 = arith.addf %88, %89 : vector<8x32xf32>
    %91 = math.tanh %90 : vector<8x32xf32>
    %92 = arith.mulf %85, %91 : vector<8x32xf32>
    %93 = vector.extract_strided_slice %5 {offsets = [32, 0], sizes = [8, 128], strides = [1, 1]} : vector<64x128xf32> to vector<8x128xf32>
    %94 = arith.truncf %92 : vector<8x32xf32> to vector<8x32xbf16>
    %cst_25 = arith.constant dense<0.000000e+00> : vector<8x128xf32>
    %95 = tpu.matmul %94, %6, %cst_25 {dimension_numbers = #tpu.dot_dimension_numbers<[1], [0], [0], [1], [0, 0, 1, 1], [], []>} : vector<8x32xbf16>, vector<32x128xbf16>, vector<8x128xf32> -> vector<8x128xf32>
    %96 = arith.addf %93, %95 : vector<8x128xf32>
    %cst_26 = arith.constant 5.000000e-01 : f32
    %97 = vector.broadcast %cst_26 : f32 to vector<8x128xf32>
    %98 = arith.mulf %97, %96 : vector<8x128xf32>
    %99 = math.tanh %98 : vector<8x128xf32>
    %cst_27 = arith.constant 5.000000e-01 : f32
    %100 = vector.broadcast %cst_27 : f32 to vector<8x128xf32>
    %101 = arith.mulf %100, %99 : vector<8x128xf32>
    %cst_28 = arith.constant 5.000000e-01 : f32
    %102 = vector.broadcast %cst_28 : f32 to vector<8x128xf32>
    %103 = arith.addf %101, %102 : vector<8x128xf32>
    %104 = vector.extract_strided_slice %103 {offsets = [0, 0], sizes = [8, 32], strides = [1, 1]} : vector<8x128xf32> to vector<8x32xf32>
    %105 = vector.extract_strided_slice %103 {offsets = [0, 32], sizes = [8, 32], strides = [1, 1]} : vector<8x128xf32> to vector<8x32xf32>
    %106 = vector.extract_strided_slice %103 {offsets = [0, 96], sizes = [8, 32], strides = [1, 1]} : vector<8x128xf32> to vector<8x32xf32>
    %107 = vector.extract_strided_slice %96 {offsets = [0, 64], sizes = [8, 32], strides = [1, 1]} : vector<8x128xf32> to vector<8x32xf32>
    %108 = math.tanh %107 : vector<8x32xf32>
    %109 = arith.mulf %105, %90 : vector<8x32xf32>
    %110 = arith.mulf %104, %108 : vector<8x32xf32>
    %111 = arith.addf %109, %110 : vector<8x32xf32>
    %112 = math.tanh %111 : vector<8x32xf32>
    %113 = arith.mulf %106, %112 : vector<8x32xf32>
    %114 = vector.extract_strided_slice %5 {offsets = [40, 0], sizes = [8, 128], strides = [1, 1]} : vector<64x128xf32> to vector<8x128xf32>
    %115 = arith.truncf %113 : vector<8x32xf32> to vector<8x32xbf16>
    %cst_29 = arith.constant dense<0.000000e+00> : vector<8x128xf32>
    %116 = tpu.matmul %115, %6, %cst_29 {dimension_numbers = #tpu.dot_dimension_numbers<[1], [0], [0], [1], [0, 0, 1, 1], [], []>} : vector<8x32xbf16>, vector<32x128xbf16>, vector<8x128xf32> -> vector<8x128xf32>
    %117 = arith.addf %114, %116 : vector<8x128xf32>
    %cst_30 = arith.constant 5.000000e-01 : f32
    %118 = vector.broadcast %cst_30 : f32 to vector<8x128xf32>
    %119 = arith.mulf %118, %117 : vector<8x128xf32>
    %120 = math.tanh %119 : vector<8x128xf32>
    %cst_31 = arith.constant 5.000000e-01 : f32
    %121 = vector.broadcast %cst_31 : f32 to vector<8x128xf32>
    %122 = arith.mulf %121, %120 : vector<8x128xf32>
    %cst_32 = arith.constant 5.000000e-01 : f32
    %123 = vector.broadcast %cst_32 : f32 to vector<8x128xf32>
    %124 = arith.addf %122, %123 : vector<8x128xf32>
    %125 = vector.extract_strided_slice %124 {offsets = [0, 0], sizes = [8, 32], strides = [1, 1]} : vector<8x128xf32> to vector<8x32xf32>
    %126 = vector.extract_strided_slice %124 {offsets = [0, 32], sizes = [8, 32], strides = [1, 1]} : vector<8x128xf32> to vector<8x32xf32>
    %127 = vector.extract_strided_slice %124 {offsets = [0, 96], sizes = [8, 32], strides = [1, 1]} : vector<8x128xf32> to vector<8x32xf32>
    %128 = vector.extract_strided_slice %117 {offsets = [0, 64], sizes = [8, 32], strides = [1, 1]} : vector<8x128xf32> to vector<8x32xf32>
    %129 = math.tanh %128 : vector<8x32xf32>
    %130 = arith.mulf %126, %111 : vector<8x32xf32>
    %131 = arith.mulf %125, %129 : vector<8x32xf32>
    %132 = arith.addf %130, %131 : vector<8x32xf32>
    %133 = math.tanh %132 : vector<8x32xf32>
    %134 = arith.mulf %127, %133 : vector<8x32xf32>
    %135 = vector.extract_strided_slice %5 {offsets = [48, 0], sizes = [8, 128], strides = [1, 1]} : vector<64x128xf32> to vector<8x128xf32>
    %136 = arith.truncf %134 : vector<8x32xf32> to vector<8x32xbf16>
    %cst_33 = arith.constant dense<0.000000e+00> : vector<8x128xf32>
    %137 = tpu.matmul %136, %6, %cst_33 {dimension_numbers = #tpu.dot_dimension_numbers<[1], [0], [0], [1], [0, 0, 1, 1], [], []>} : vector<8x32xbf16>, vector<32x128xbf16>, vector<8x128xf32> -> vector<8x128xf32>
    %138 = arith.addf %135, %137 : vector<8x128xf32>
    %cst_34 = arith.constant 5.000000e-01 : f32
    %139 = vector.broadcast %cst_34 : f32 to vector<8x128xf32>
    %140 = arith.mulf %139, %138 : vector<8x128xf32>
    %141 = math.tanh %140 : vector<8x128xf32>
    %cst_35 = arith.constant 5.000000e-01 : f32
    %142 = vector.broadcast %cst_35 : f32 to vector<8x128xf32>
    %143 = arith.mulf %142, %141 : vector<8x128xf32>
    %cst_36 = arith.constant 5.000000e-01 : f32
    %144 = vector.broadcast %cst_36 : f32 to vector<8x128xf32>
    %145 = arith.addf %143, %144 : vector<8x128xf32>
    %146 = vector.extract_strided_slice %145 {offsets = [0, 0], sizes = [8, 32], strides = [1, 1]} : vector<8x128xf32> to vector<8x32xf32>
    %147 = vector.extract_strided_slice %145 {offsets = [0, 32], sizes = [8, 32], strides = [1, 1]} : vector<8x128xf32> to vector<8x32xf32>
    %148 = vector.extract_strided_slice %145 {offsets = [0, 96], sizes = [8, 32], strides = [1, 1]} : vector<8x128xf32> to vector<8x32xf32>
    %149 = vector.extract_strided_slice %138 {offsets = [0, 64], sizes = [8, 32], strides = [1, 1]} : vector<8x128xf32> to vector<8x32xf32>
    %150 = math.tanh %149 : vector<8x32xf32>
    %151 = arith.mulf %147, %132 : vector<8x32xf32>
    %152 = arith.mulf %146, %150 : vector<8x32xf32>
    %153 = arith.addf %151, %152 : vector<8x32xf32>
    %154 = math.tanh %153 : vector<8x32xf32>
    %155 = arith.mulf %148, %154 : vector<8x32xf32>
    %156 = vector.extract_strided_slice %5 {offsets = [56, 0], sizes = [8, 128], strides = [1, 1]} : vector<64x128xf32> to vector<8x128xf32>
    %157 = arith.truncf %155 : vector<8x32xf32> to vector<8x32xbf16>
    %cst_37 = arith.constant dense<0.000000e+00> : vector<8x128xf32>
    %158 = tpu.matmul %157, %6, %cst_37 {dimension_numbers = #tpu.dot_dimension_numbers<[1], [0], [0], [1], [0, 0, 1, 1], [], []>} : vector<8x32xbf16>, vector<32x128xbf16>, vector<8x128xf32> -> vector<8x128xf32>
    %159 = arith.addf %156, %158 : vector<8x128xf32>
    %cst_38 = arith.constant 5.000000e-01 : f32
    %160 = vector.broadcast %cst_38 : f32 to vector<8x128xf32>
    %161 = arith.mulf %160, %159 : vector<8x128xf32>
    %162 = math.tanh %161 : vector<8x128xf32>
    %cst_39 = arith.constant 5.000000e-01 : f32
    %163 = vector.broadcast %cst_39 : f32 to vector<8x128xf32>
    %164 = arith.mulf %163, %162 : vector<8x128xf32>
    %cst_40 = arith.constant 5.000000e-01 : f32
    %165 = vector.broadcast %cst_40 : f32 to vector<8x128xf32>
    %166 = arith.addf %164, %165 : vector<8x128xf32>
    %167 = vector.extract_strided_slice %166 {offsets = [0, 0], sizes = [8, 32], strides = [1, 1]} : vector<8x128xf32> to vector<8x32xf32>
    %168 = vector.extract_strided_slice %166 {offsets = [0, 32], sizes = [8, 32], strides = [1, 1]} : vector<8x128xf32> to vector<8x32xf32>
    %169 = vector.extract_strided_slice %166 {offsets = [0, 96], sizes = [8, 32], strides = [1, 1]} : vector<8x128xf32> to vector<8x32xf32>
    %170 = vector.extract_strided_slice %159 {offsets = [0, 64], sizes = [8, 32], strides = [1, 1]} : vector<8x128xf32> to vector<8x32xf32>
    %171 = math.tanh %170 : vector<8x32xf32>
    %172 = arith.mulf %168, %153 : vector<8x32xf32>
    %173 = arith.mulf %167, %171 : vector<8x32xf32>
    %174 = arith.addf %172, %173 : vector<8x32xf32>
    %175 = math.tanh %174 : vector<8x32xf32>
    %176 = arith.mulf %169, %175 : vector<8x32xf32>
    %177 = arith.truncf %176 : vector<8x32xf32> to vector<8x32xbf16>
    %c0_41 = arith.constant 0 : index
    %c0_42 = arith.constant 0 : index
    %178 = vector.load %arg4[%c0_41, %c0_42] : memref<32x32xbf16, #tpu.memory_space<vmem>>, vector<32x32xbf16>
    %cst_43 = arith.constant dense<0.000000e+00> : vector<8x32xf32>
    %179 = tpu.matmul %177, %178, %cst_43 {dimension_numbers = #tpu.dot_dimension_numbers<[1], [0], [0], [1], [0, 0, 1, 1], [], []>} : vector<8x32xbf16>, vector<32x32xbf16>, vector<8x32xf32> -> vector<8x32xf32>
    %c0_44 = arith.constant 0 : index
    %c0_45 = arith.constant 0 : index
    %180 = vector.load %arg5[%c0_44, %c0_45] : memref<1x32xf32, #tpu.memory_space<vmem>>, vector<1x32xf32>
    %181 = vector.broadcast %180 : vector<1x32xf32> to vector<8x32xf32>
    %182 = arith.addf %179, %181 : vector<8x32xf32>
    %c0_46 = arith.constant 0 : index
    %c0_47 = arith.constant 0 : index
    %183 = memref.load %arg6[%c0_46, %c0_47] : memref<1x1xf32, #tpu.memory_space<smem>>
    %cst_48 = arith.constant 0.000000e+00 : f32
    %184 = vector.broadcast %cst_48 : f32 to vector<8x32xf32>
    %185 = arith.cmpf oge, %182, %184 : vector<8x32xf32>
    %186 = vector.broadcast %183 : f32 to vector<8x32xf32>
    %187 = arith.mulf %186, %182 : vector<8x32xf32>
    %188 = arith.select %185, %182, %187 : vector<8x32xi1>, vector<8x32xf32>
    %189 = arith.truncf %188 : vector<8x32xf32> to vector<8x32xbf16>
    %c0_49 = arith.constant 0 : index
    %c0_50 = arith.constant 0 : index
    %190 = vector.load %arg7[%c0_49, %c0_50] : memref<32x8xbf16, #tpu.memory_space<vmem>>, vector<32x8xbf16>
    %cst_51 = arith.constant dense<0.000000e+00> : vector<8x8xf32>
    %191 = tpu.matmul %189, %190, %cst_51 {dimension_numbers = #tpu.dot_dimension_numbers<[1], [0], [0], [1], [0, 0, 1, 1], [], []>} : vector<8x32xbf16>, vector<32x8xbf16>, vector<8x8xf32> -> vector<8x8xf32>
    %c0_52 = arith.constant 0 : index
    %c0_53 = arith.constant 0 : index
    %192 = vector.load %arg8[%c0_52, %c0_53] : memref<1x8xf32, #tpu.memory_space<vmem>>, vector<1x8xf32>
    %193 = vector.broadcast %192 : vector<1x8xf32> to vector<8x8xf32>
    %194 = arith.addf %191, %193 : vector<8x8xf32>
    %cst_54 = arith.constant 5.000000e-01 : f32
    %195 = vector.broadcast %cst_54 : f32 to vector<8x8xf32>
    %196 = arith.mulf %195, %194 : vector<8x8xf32>
    %197 = math.tanh %196 : vector<8x8xf32>
    %cst_55 = arith.constant 5.000000e-01 : f32
    %198 = vector.broadcast %cst_55 : f32 to vector<8x8xf32>
    %199 = arith.mulf %198, %197 : vector<8x8xf32>
    %cst_56 = arith.constant 5.000000e-01 : f32
    %200 = vector.broadcast %cst_56 : f32 to vector<8x8xf32>
    %201 = arith.addf %199, %200 : vector<8x8xf32>
    %c0_57 = arith.constant 0 : index
    %c0_58 = arith.constant 0 : index
    %202 = vector.load %arg9[%c0_57, %c0_58] : memref<8x8xf32, #tpu.memory_space<vmem>>, vector<8x8xf32>
    tpu.vector_store %arg9[%c0_57, %c0_58], %201 {strides = array<i32>} : memref<8x8xf32, #tpu.memory_space<vmem>>, vector<8x8xf32>,
    return
  }
}

</mosaic_0001>

<bundles_post_ra>
// kernel: lstm_model_forward.1
= control target key start
LH: loop header
LB: loop body
LE: loop exit
PB: predicated region body
PF: predicated region fallthrough
CT: control target
= control target key end

     0   :  { %v1098_v0 = vmov 0.0   ;;  %vm1099_vm0 = vmmov 0   ;;  %vm77_vm1 = vcmask 130048   ;;  %v1100_v6 = vmov 0   ;;  %s1101_s19 = smov 64   ;;  %s1334_s1 = inlined_call_operand.vmem [shape: bf16[16,128], index: 1, kind: input, shape index: {}]   ;;  %s1335_s2 = inlined_call_operand.vmem [shape: bf16[32,128], index: 2, kind: input, shape index: {}]   ;;  %s1336_s0 = inlined_call_operand.vmem [shape: bf16[64,16], index: 0, kind: input, shape index: {}]   ;;  %s1337_s3 = inlined_call_operand.vmem [shape: f32[1,128], index: 3, kind: input, shape index: {}]   ;;  %s1338_s4 = inlined_call_operand.vmem [shape: bf16[32,32], index: 4, kind: input, shape index: {}]   ;;  %s1339_s7 = inlined_call_operand.vmem [shape: bf16[32,8], index: 7, kind: input, shape index: {}]   ;;  %s1340_s5 = inlined_call_operand.vmem [shape: f32[1,32], index: 5, kind: input, shape index: {}]   ;;  %s1341_s6 = inlined_call_operand.<no memory space> [shape: f32[1,1], index: 6, kind: input, shape index: {}]   ;;  %s1342_s8 = inlined_call_operand.vmem [shape: f32[1,8], index: 8, kind: input, shape index: {}]   ;;  %s1343_s9 = inlined_call_operand.vmem [shape: f32[8,8], index: 9, kind: output, shape index: {}]  }
   0x1   :  { %952 = vmatprep.subr.bf16.mxu1 %v1098_v0  ;;  %v1037_v1 = vld [vmem:[%s1334_s1] sm:$0xff]   ;;  %956 = vmatprep.mubr.msk.bf16.mxu1 %vm1099_vm0, %v1098_v0  ;;  %v1040_v4 = vld [vmem:[%s1336_s0 + $0x8] sm:$0xff]   ;;  %vm171_vm2 = vcmask 261120   ;;  %v1042_v49 = vld [vmem:[%s1336_s0 + $0x10] sm:$0xff]   ;;  %vm874_vm4 = vcmask 64512  }
   0x2   :  { %v1162_v2 = vld [vmem:[%s1335_s2] sm:$0xff]   ;;  %942 = vmatprep.subr.bf16.mxu0 %v1037_v1  ;;  %v1176_v5 = vld [vmem:[%s1335_s2 + $0x8] sm:$0xff]   ;;  %v1043_v50 = vld [vmem:[%s1336_s0 + $0x18] sm:$0xff]  }
   0x3   :  { %v1039_v3 = vld [vmem:[%s1336_s0] sm:$0xff]   ;;  %953 = vmatpush3.bf16.msra.mxu1 %v1162_v2  ;;  %943 = vmatpush3.bf16.msra.mxu0 %v1037_v1 }
   0x4   :  { %944 = vmatprep.mubr.msk.bf16.mxu0 %vm77_vm1, %v1039_v3  ;;  %954 = vmatprep.subr.bf16.mxu1 %v1098_v0  ;;  %v1195_v7 = vld [vmem:[%s1337_s3] ss:$0 sm:$0xff]  ;;  %s1102_s3 = smov 32  }
   0x5   :  { %968 = vmatprep.subr.bf16.mxu0 %v1098_v0 }
   0x6   :  { %945 = vmatmul.mubr.msk.bf16.vlgmr.msra.gmra.mrb[0].mxu0 %vm77_vm1, %v1040_v4 }
   0x7   :  { %955 = vmatpush3.bf16.msra.mxu1 %v1176_v5  ;;  %969 = vmatpush3.bf16.msra.mxu0 %v1162_v2 }
   0x8   :  { %960 = vmatprep.subr.bf16.mxu1 %v1098_v0  ;;  %970 = vmatprep.subr.bf16.mxu0 %v1098_v0 }
   0x9   :  { %948 = vmatprep.mubr.msk.bf16.mxu0 %vm77_vm1, %v1042_v49 }
   0xa   :  { %957 = vmatmul.mubr.bf16.vlgmr.msra.gmra.mrb[0].mxu1 %v1100_v6 }
   0xb   :  { %961 = vmatpush3.bf16.msra.mxu1 %v1162_v2  ;;  %964 = vmatprep.mubr.msk.bf16.mxu1 %vm1099_vm0, %v1098_v0 }
   0xc   :  { %962 = vmatprep.subr.bf16.mxu1 %v1098_v0  ;;  %971 = vmatpush3.bf16.msra.mxu0 %v1176_v5 }
   0xd   :  { %984 = vmatprep.subr.bf16.mxu0 %v1098_v0 }
   0xe   :  { %949 = vmatmul.mubr.msk.bf16.gmra.mrb[4].mxu0 %vm77_vm1, %v1043_v50 }
   0xf   :  { %963 = vmatpush3.bf16.msra.mxu1 %v1176_v5  ;;  %972 = vmatprep.mubr.msk.bf16.mxu0 %vm1099_vm0, %v1098_v0 }
  0x10   :  { %976 = vmatprep.subr.bf16.mxu1 %v1098_v0 }
  0xd9   :  { %v1197_v8 = vpop.f32.mrb[0].mxu0 }
  0xda   :  { %v124_v9 = vpop.f32.mrb[1].mxu0  ;;  %v133_v60 = vadd.f32 %v1197_v8, %v1195_v7 }
  0xdb   :  { %v125_v10 = vadd.f32 %v1195_v7, %v124_v9  ;;  %v1200_v11 = vpop.f32.mrb[2].mxu0 }
  0xdc   :  { %v127_v12 = vpop.f32.mrb[3].mxu0 }
  0xdd   :  { %v209_v13 = vpop.f32.mrb[0].mxu1  ;;  %v128_v33 = vadd.f32 %v1195_v7, %v127_v12 }
  0xde   :  { %v215_v14 = vadd.f32 %v209_v13, %v125_v10  ;;  %v958_v15 = vpop.f32.mrb[1].mxu1 }
  0xdf   :  { %v212_v16 = vpop.f32.mrb[2].mxu1 }
  0xe0   :  { %1048 = vtanh.f32 %v215_v14  ;;  %v959_v17 = vpop.f32.mrb[3].mxu1  ;;  %v216_v19 = vmul.f32 0.5, %v215_v14 }
  0xe1   :  { %v1228_v55 = vpop.f32.mrb[4].mxu0 }
  0xe2   :  { %1050 = vtanh.f32 %v216_v19  ;;  %v1230_v56 = vpop.f32.mrb[5].mxu0 }
  0xe3   :  { %v1232_v57 = vpop.f32.mrb[6].mxu0 }
  0xe4   :  { %v1234_v58 = vpop.f32.mrb[7].mxu0 }
  0xea   :  { %v1049_v18 = vpop.eup %1048 }
  0xeb   :  { %223 = vrot.lane.b32.xlu0 %v1049_v18, %s1101_s19 }
  0xec   :  { %v1051_v20 = vpop.eup %1050 }
  0xed   :  { %v218_v21 = vmul.f32 0.5, %v1051_v20 }
  0xef   :  { %v219_v22 = vadd.f32 0.5, %v218_v21 }
  0xf1   :  { %v221_v25 = vmul.f32 0.0, %v219_v22 }
 0x15d   :  { %v224_v23 = vpop.permute.xlu0 %223 }
 0x15e   :  { %v226_v24 = vmul.f32 %v224_v23, %v219_v22 }
 0x160   :  { %228 = vrot.lane.b32.xlu0 %v226_v24, %s1102_s3 }
 0x1d2   :  { %v229_v26 = vpop.permute.xlu0 %228 }
 0x1d3   :  { %v231_v27 = vadd.f32 %v229_v26, %v221_v25 }
 0x1d5   :  { %1052 = vtanh.f32 %v231_v27 }
 0x1df   :  { %v1053_v28 = vpop.eup %1052 }
 0x1e0   :  { %234 = vrot.lane.b32.xlu1 %v1053_v28, %s1101_s19 }
 0x252   :  { %v235_v29 = vpop.permute.xlu1 %234 }
 0x253   :  { %v237_v30 = vmul.f32 %v235_v29, %v219_v22  ;;  %v136_v22 = vadd.f32 %v1200_v11, %v1195_v7 }
 0x255   :  { %v238_v31 = vpack.c.bf16 %v237_v30, %v237_v30 }
 0x257   :  { %240 = vrot.lane.b32.xlu1 %v238_v31, %s1102_s3 }
 0x2c9   :  { %v241_v32 = vpop.permute.xlu1 %240 }
 0x2ca   :  { %965 = vmatmul.mubr.msk.bf16.vlgmr.msra.gmra.mrb[4].mxu1 %vm171_vm2, %v241_v32 }
 0x2cb   :  { %977 = vmatpush3.bf16.msra.mxu1 %v1162_v2  ;;  %980 = vmatprep.mubr.msk.bf16.mxu1 %vm1099_vm0, %v1098_v0 }
 0x2cc   :  { %978 = vmatprep.subr.bf16.mxu1 %v1098_v0 }
 0x2cf   :  { %979 = vmatpush3.bf16.msra.mxu1 %v1176_v5 }
 0x2d0   :  { %992 = vmatprep.subr.bf16.mxu1 %v1098_v0 }
 0x39d   :  { %v279_v34 = vpop.f32.mrb[4].mxu1 }
 0x39e   :  { %v285_v35 = vadd.f32 %v279_v34, %v128_v33  ;;  %v966_v36 = vpop.f32.mrb[5].mxu1 }
 0x39f   :  { %v282_v37 = vpop.f32.mrb[6].mxu1 }
 0x3a0   :  { %1054 = vtanh.f32 %v285_v35  ;;  %v967_v38 = vpop.f32.mrb[7].mxu1  ;;  %v286_v40 = vmul.f32 0.5, %v285_v35 }
 0x3a2   :  { %1056 = vtanh.f32 %v286_v40 }
 0x3aa   :  { %v1055_v39 = vpop.eup %1054 }
 0x3ab   :  { %293 = vrot.lane.b32.xlu0 %v1055_v39, %s1101_s19 }
 0x3ac   :  { %v1057_v41 = vpop.eup %1056 }
 0x3ad   :  { %v288_v42 = vmul.f32 0.5, %v1057_v41 }
 0x3af   :  { %v289_v43 = vadd.f32 0.5, %v288_v42  ;;  %v141_v42 = vadd.f32 %v1195_v7, %v1230_v56 }
 0x3b1   :  { %v291_v46 = vmul.f32 %v289_v43, %v231_v27 }
 0x41d   :  { %v294_v44 = vpop.permute.xlu0 %293 }
 0x41e   :  { %v296_v45 = vmul.f32 %v294_v44, %v289_v43 }
 0x420   :  { %298 = vrot.lane.b32.xlu1 %v296_v45, %s1102_s3 }
 0x492   :  { %v299_v47 = vpop.permute.xlu1 %298 }
 0x493   :  { %v301_v48 = vadd.f32 %v299_v47, %v291_v46 }
 0x495   :  { %1058 = vtanh.f32 %v301_v48 }
 0x49f   :  { %v1059_v51 = vpop.eup %1058 }
 0x4a0   :  { %304 = vrot.lane.b32.xlu0 %v1059_v51, %s1101_s19 }
 0x512   :  { %v305_v52 = vpop.permute.xlu0 %304 }
 0x513   :  { %v307_v53 = vmul.f32 %v305_v52, %v289_v43 }
 0x515   :  { %v308_v54 = vpack.c.bf16 %v307_v53, %v307_v53 }
 0x517   :  { %310 = vrot.lane.b32.xlu1 %v308_v54, %s1102_s3 }
 0x589   :  { %v311_v59 = vpop.permute.xlu1 %310 }
 0x58a   :  { %973 = vmatmul.mubr.msk.bf16.vlgmr.msra.gmra.mrb[8].mxu0 %vm171_vm2, %v311_v59 }
 0x58b   :  { %985 = vmatpush3.bf16.msra.mxu0 %v1162_v2  ;;  %988 = vmatprep.mubr.msk.bf16.mxu0 %vm1099_vm0, %v1098_v0 }
 0x58c   :  { %986 = vmatprep.subr.bf16.mxu0 %v1098_v0 }
 0x58f   :  { %987 = vmatpush3.bf16.msra.mxu0 %v1176_v5 }
 0x590   :  { %1000 = vmatprep.subr.bf16.mxu0 %v1098_v0 }
 0x65d   :  { %v349_v61 = vpop.f32.mrb[8].mxu0 }
 0x65e   :  { %v355_v62 = vadd.f32 %v349_v61, %v133_v60  ;;  %v974_v63 = vpop.f32.mrb[9].mxu0 }
 0x65f   :  { %v352_v1 = vpop.f32.mrb[10].mxu0 }
 0x660   :  { %1060 = vtanh.f32 %v355_v62  ;;  %v975_v3 = vpop.f32.mrb[11].mxu0  ;;  %v356_v6 = vmul.f32 0.5, %v355_v62 }
 0x662   :  { %1062 = vtanh.f32 %v356_v6 }
 0x66a   :  { %v1061_v4 = vpop.eup %1060 }
 0x66b   :  { %363 = vrot.lane.b32.xlu0 %v1061_v4, %s1101_s19  ;;  %v144_v4 = vadd.f32 %v1195_v7, %v1234_v58 }
 0x66c   :  { %v1063_v9 = vpop.eup %1062 }
 0x66d   :  { %v358_v10 = vmul.f32 0.5, %v1063_v9 }
 0x66f   :  { %v359_v12 = vadd.f32 0.5, %v358_v10 }
 0x671   :  { %v361_v15 = vmul.f32 %v359_v12, %v301_v48 }
 0x6dd   :  { %v364_v13 = vpop.permute.xlu0 %363 }
 0x6de   :  { %v366_v14 = vmul.f32 %v364_v13, %v359_v12 }
 0x6e0   :  { %368 = vrot.lane.b32.xlu1 %v366_v14, %s1102_s3 }
 0x752   :  { %v369_v8 = vpop.permute.xlu1 %368 }
 0x753   :  { %v371_v16 = vadd.f32 %v369_v8, %v361_v15 }
 0x755   :  { %1064 = vtanh.f32 %v371_v16 }
 0x75f   :  { %v1065_v17 = vpop.eup %1064 }
 0x760   :  { %374 = vrot.lane.b32.xlu0 %v1065_v17, %s1101_s19 }
 0x7d2   :  { %v375_v18 = vpop.permute.xlu0 %374 }
 0x7d3   :  { %v377_v19 = vmul.f32 %v375_v18, %v359_v12 }
 0x7d5   :  { %v378_v20 = vpack.c.bf16 %v377_v19, %v377_v19 }
 0x7d7   :  { %380 = vrot.lane.b32.xlu1 %v378_v20, %s1102_s3 }
 0x849   :  { %v381_v21 = vpop.permute.xlu1 %380 }
 0x84a   :  { %981 = vmatmul.mubr.msk.bf16.vlgmr.msra.gmra.mrb[8].mxu1 %vm171_vm2, %v381_v21 }
 0x84b   :  { %993 = vmatpush3.bf16.msra.mxu1 %v1162_v2  ;;  %996 = vmatprep.mubr.msk.bf16.mxu1 %vm1099_vm0, %v1098_v0 }
 0x84c   :  { %994 = vmatprep.subr.bf16.mxu1 %v1098_v0 }
 0x84f   :  { %995 = vmatpush3.bf16.msra.mxu1 %v1176_v5 }
 0x850   :  { %1008 = vmatprep.subr.bf16.mxu1 %v1098_v0 }
 0x91d   :  { %v419_v23 = vpop.f32.mrb[8].mxu1 }
 0x91e   :  { %v425_v24 = vadd.f32 %v419_v23, %v136_v22  ;;  %v982_v25 = vpop.f32.mrb[9].mxu1 }
 0x91f   :  { %v422_v26 = vpop.f32.mrb[10].mxu1  ;;  %v149_v25 = vadd.f32 %v1228_v55, %v1195_v7 }
 0x920   :  { %1066 = vtanh.f32 %v425_v24  ;;  %v983_v27 = vpop.f32.mrb[11].mxu1  ;;  %v426_v29 = vmul.f32 0.5, %v425_v24 }
 0x922   :  { %1068 = vtanh.f32 %v426_v29 }
 0x92a   :  { %v1067_v28 = vpop.eup %1066 }
 0x92b   :  { %433 = vrot.lane.b32.xlu0 %v1067_v28, %s1101_s19 }
 0x92c   :  { %v1069_v30 = vpop.eup %1068 }
 0x92d   :  { %v428_v31 = vmul.f32 0.5, %v1069_v30 }
 0x92f   :  { %v429_v32 = vadd.f32 0.5, %v428_v31 }
 0x931   :  { %v431_v35 = vmul.f32 %v429_v32, %v371_v16 }
 0x99d   :  { %v434_v33 = vpop.permute.xlu0 %433 }
 0x99e   :  { %v436_v34 = vmul.f32 %v434_v33, %v429_v32 }
 0x9a0   :  { %438 = vrot.lane.b32.xlu1 %v436_v34, %s1102_s3 }
 0xa12   :  { %v439_v11 = vpop.permute.xlu1 %438 }
 0xa13   :  { %v441_v36 = vadd.f32 %v439_v11, %v431_v35 }
 0xa15   :  { %1070 = vtanh.f32 %v441_v36 }
 0xa1f   :  { %v1071_v37 = vpop.eup %1070 }
 0xa20   :  { %444 = vrot.lane.b32.xlu0 %v1071_v37, %s1101_s19 }
 0xa92   :  { %v445_v38 = vpop.permute.xlu0 %444 }
 0xa93   :  { %v447_v39 = vmul.f32 %v445_v38, %v429_v32 }
 0xa95   :  { %v448_v40 = vpack.c.bf16 %v447_v39, %v447_v39 }
 0xa97   :  { %450 = vrot.lane.b32.xlu1 %v448_v40, %s1102_s3 }
 0xb09   :  { %v451_v41 = vpop.permute.xlu1 %450 }
 0xb0a   :  { %989 = vmatmul.mubr.msk.bf16.vlgmr.msra.gmra.mrb[12].mxu0 %vm171_vm2, %v451_v41 }
 0xb0b   :  { %1001 = vmatpush3.bf16.msra.mxu0 %v1162_v2  ;;  %1004 = vmatprep.mubr.msk.bf16.mxu0 %vm1099_vm0, %v1098_v0 }
 0xb0c   :  { %1002 = vmatprep.subr.bf16.mxu0 %v1098_v0 }
 0xb0f   :  { %1003 = vmatpush3.bf16.msra.mxu0 %v1176_v5 }
 0xb10   :  { %1016 = vmatprep.subr.bf16.mxu0 %v1098_v0 }
 0xbdd   :  { %v489_v43 = vpop.f32.mrb[12].mxu0 }
 0xbde   :  { %v495_v44 = vadd.f32 %v489_v43, %v141_v42  ;;  %v990_v45 = vpop.f32.mrb[13].mxu0 }
 0xbdf   :  { %v492_v46 = vpop.f32.mrb[14].mxu0 }
 0xbe0   :  { %1072 = vtanh.f32 %v495_v44  ;;  %v991_v47 = vpop.f32.mrb[15].mxu0  ;;  %v496_v49 = vmul.f32 0.5, %v495_v44  ;;  %v152_v44 = vadd.f32 %v1232_v57, %v1195_v7 }
 0xbe2   :  { %1074 = vtanh.f32 %v496_v49 }
 0xbea   :  { %v1073_v48 = vpop.eup %1072 }
 0xbeb   :  { %503 = vrot.lane.b32.xlu0 %v1073_v48, %s1101_s19 }
 0xbec   :  { %v1075_v50 = vpop.eup %1074 }
 0xbed   :  { %v498_v51 = vmul.f32 0.5, %v1075_v50 }
 0xbef   :  { %v499_v52 = vadd.f32 0.5, %v498_v51 }
 0xbf1   :  { %v501_v59 = vmul.f32 %v499_v52, %v441_v36 }
 0xc5d   :  { %v504_v53 = vpop.permute.xlu0 %503 }
 0xc5e   :  { %v506_v54 = vmul.f32 %v504_v53, %v499_v52 }
 0xc60   :  { %508 = vrot.lane.b32.xlu1 %v506_v54, %s1102_s3 }
 0xcd2   :  { %v509_v56 = vpop.permute.xlu1 %508 }
 0xcd3   :  { %v511_v60 = vadd.f32 %v509_v56, %v501_v59 }
 0xcd5   :  { %1076 = vtanh.f32 %v511_v60 }
 0xcdf   :  { %v1077_v61 = vpop.eup %1076 }
 0xce0   :  { %514 = vrot.lane.b32.xlu0 %v1077_v61, %s1101_s19  ;;  %v1044_v61 = vld [vmem:[%s1338_s4] sm:$0xff]  }
 0xd52   :  { %v515_v62 = vpop.permute.xlu0 %514 }
 0xd53   :  { %v517_v63 = vmul.f32 %v515_v62, %v499_v52  ;;  %v1045_v62 = vld [vmem:[%s1338_s4 + $0x8] sm:$0xff]  }
 0xd55   :  { %v518_v1 = vpack.c.bf16 %v517_v63, %v517_v63 }
 0xd57   :  { %520 = vrot.lane.b32.xlu1 %v518_v1, %s1102_s3 }
 0xdc9   :  { %v521_v3 = vpop.permute.xlu1 %520 }
 0xdca   :  { %997 = vmatmul.mubr.msk.bf16.vlgmr.msra.gmra.mrb[12].mxu1 %vm171_vm2, %v521_v3 }
 0xdcb   :  { %1009 = vmatpush3.bf16.msra.mxu1 %v1162_v2  ;;  %1012 = vmatprep.mubr.msk.bf16.mxu1 %vm1099_vm0, %v1098_v0 }
 0xdcc   :  { %1010 = vmatprep.subr.bf16.mxu1 %v1098_v0 }
 0xdcf   :  { %1011 = vmatpush3.bf16.msra.mxu1 %v1176_v5 }
 0xdd0   :  { %1024 = vmatprep.subr.bf16.mxu1 %v1098_v0 }
 0xe9d   :  { %v559_v6 = vpop.f32.mrb[12].mxu1 }
 0xe9e   :  { %v565_v9 = vadd.f32 %v559_v6, %v144_v4  ;;  %v998_v10 = vpop.f32.mrb[13].mxu1 }
 0xe9f   :  { %v562_v12 = vpop.f32.mrb[14].mxu1  ;;  %v1047_v10 = vld [vmem:[%s1339_s7 + $0x8] sm:$0xff]  }
 0xea0   :  { %1078 = vtanh.f32 %v565_v9  ;;  %v999_v13 = vpop.f32.mrb[15].mxu1  ;;  %v566_v2 = vmul.f32 0.5, %v565_v9  ;;  %v1046_v9 = vld [vmem:[%s1339_s7] sm:$0xff]  }
 0xea1   :  { %v899_v12 = vld [vmem:[%s1340_s5] ss:$0 sm:$0xff] }
 0xea2   :  { %1080 = vtanh.f32 %v566_v2 }
 0xeaa   :  { %v1079_v14 = vpop.eup %1078 }
 0xeab   :  { %573 = vrot.lane.b32.xlu0 %v1079_v14, %s1101_s19  ;;  %v800_v14 = vstv %s1341_s6 }
 0xeac   :  { %v1081_v15 = vpop.eup %1080 }
 0xead   :  { %v568_v8 = vmul.f32 0.5, %v1081_v15 }
 0xeaf   :  { %v569_v16 = vadd.f32 0.5, %v568_v8 }
 0xeb1   :  { %v571_v18 = vmul.f32 %v569_v16, %v511_v60 }
 0xf1d   :  { %v574_v5 = vpop.permute.xlu0 %573 }
 0xf1e   :  { %v576_v17 = vmul.f32 %v574_v5, %v569_v16 }
 0xf20   :  { %578 = vrot.lane.b32.xlu1 %v576_v17, %s1102_s3 }
 0xf92   :  { %v579_v58 = vpop.permute.xlu1 %578 }
 0xf93   :  { %v581_v19 = vadd.f32 %v579_v58, %v571_v18  ;;  %v903_v18 = vld [vmem:[%s1342_s8] ss:$0 sm:$0xff] }
 0xf95   :  { %1082 = vtanh.f32 %v581_v19 }
 0xf9f   :  { %v1083_v20 = vpop.eup %1082 }
 0xfa0   :  { %584 = vrot.lane.b32.xlu0 %v1083_v20, %s1101_s19 }
0x1012   :  { %v585_v21 = vpop.permute.xlu0 %584 }
0x1013   :  { %v587_v22 = vmul.f32 %v585_v21, %v569_v16 }
0x1015   :  { %v588_v23 = vpack.c.bf16 %v587_v22, %v587_v22 }
0x1017   :  { %590 = vrot.lane.b32.xlu1 %v588_v23, %s1102_s3 }
0x1089   :  { %v591_v24 = vpop.permute.xlu1 %590 }
0x108a   :  { %1005 = vmatmul.mubr.msk.bf16.vlgmr.msra.gmra.mrb[16].mxu0 %vm171_vm2, %v591_v24 }
0x108b   :  { %1020 = vmatprep.mubr.msk.bf16.mxu0 %vm1099_vm0, %v1098_v0  ;;  %1017 = vmatpush3.bf16.msra.mxu0 %v1044_v61 }
0x108c   :  { %1018 = vmatprep.subr.bf16.mxu0 %v1098_v0 }
0x108f   :  { %1019 = vmatpush3.bf16.msra.mxu0 %v1045_v62 }
0x115d   :  { %v629_v26 = vpop.f32.mrb[16].mxu0 }
0x115e   :  { %v635_v27 = vadd.f32 %v629_v26, %v149_v25  ;;  %v1006_v28 = vpop.f32.mrb[17].mxu0 }
0x115f   :  { %v632_v29 = vpop.f32.mrb[18].mxu0 }
0x1160   :  { %1084 = vtanh.f32 %v635_v27  ;;  %v1007_v30 = vpop.f32.mrb[19].mxu0  ;;  %v636_v32 = vmul.f32 0.5, %v635_v27 }
0x1162   :  { %1086 = vtanh.f32 %v636_v32 }
0x116a   :  { %v1085_v31 = vpop.eup %1084 }
0x116b   :  { %643 = vrot.lane.b32.xlu0 %v1085_v31, %s1101_s19 }
0x116c   :  { %v1087_v33 = vpop.eup %1086 }
0x116d   :  { %v638_v34 = vmul.f32 0.5, %v1087_v33 }
0x116f   :  { %v639_v35 = vadd.f32 0.5, %v638_v34 }
0x1171   :  { %v641_v37 = vmul.f32 %v639_v35, %v581_v19 }
0x11dd   :  { %v644_v11 = vpop.permute.xlu0 %643 }
0x11de   :  { %v646_v36 = vmul.f32 %v644_v11, %v639_v35 }
0x11e0   :  { %648 = vrot.lane.b32.xlu1 %v646_v36, %s1102_s3 }
0x1252   :  { %v649_v55 = vpop.permute.xlu1 %648 }
0x1253   :  { %v651_v38 = vadd.f32 %v649_v55, %v641_v37 }
0x1255   :  { %1088 = vtanh.f32 %v651_v38 }
0x125f   :  { %v1089_v39 = vpop.eup %1088 }
0x1260   :  { %654 = vrot.lane.b32.xlu0 %v1089_v39, %s1101_s19 }
0x12d2   :  { %v655_v40 = vpop.permute.xlu0 %654 }
0x12d3   :  { %v657_v41 = vmul.f32 %v655_v40, %v639_v35 }
0x12d5   :  { %v658_v42 = vpack.c.bf16 %v657_v41, %v657_v41 }
0x12d7   :  { %660 = vrot.lane.b32.xlu1 %v658_v42, %s1102_s3 }
0x1349   :  { %v661_v43 = vpop.permute.xlu1 %660 }
0x134a   :  { %1013 = vmatmul.mubr.msk.bf16.vlgmr.msra.gmra.mrb[16].mxu1 %vm171_vm2, %v661_v43 }
0x134b   :  { %1028 = vmatprep.mubr.msk.bf16.mxu1 %vm1099_vm0, %v1098_v0  ;;  %1025 = vmatpush3.bf16.msra.mxu1 %v1046_v9 }
0x134c   :  { %1026 = vmatprep.subr.bf16.mxu1 %v1098_v0 }
0x134f   :  { %1027 = vmatpush3.bf16.msra.mxu1 %v1047_v10 }
0x141d   :  { %v699_v45 = vpop.f32.mrb[16].mxu1 }
0x141e   :  { %v705_v46 = vadd.f32 %v699_v45, %v152_v44  ;;  %v1014_v47 = vpop.f32.mrb[17].mxu1 }
0x141f   :  { %v702_v48 = vpop.f32.mrb[18].mxu1 }
0x1420   :  { %1090 = vtanh.f32 %v705_v46  ;;  %v1015_v49 = vpop.f32.mrb[19].mxu1  ;;  %v706_v51 = vmul.f32 0.5, %v705_v46 }
0x1422   :  { %1092 = vtanh.f32 %v706_v51 }
0x142a   :  { %v1091_v50 = vpop.eup %1090 }
0x142b   :  { %713 = vrot.lane.b32.xlu0 %v1091_v50, %s1101_s19 }
0x142c   :  { %v1093_v52 = vpop.eup %1092 }
0x142d   :  { %v708_v53 = vmul.f32 0.5, %v1093_v52 }
0x142f   :  { %v709_v54 = vadd.f32 0.5, %v708_v53 }
0x1431   :  { %v711_v60 = vmul.f32 %v709_v54, %v651_v38 }
0x149d   :  { %v714_v59 = vpop.permute.xlu0 %713 }
0x149e   :  { %v716_v56 = vmul.f32 %v714_v59, %v709_v54 }
0x14a0   :  { %718 = vrot.lane.b32.xlu1 %v716_v56, %s1102_s3 }
0x1512   :  { %v719_v7 = vpop.permute.xlu1 %718 }
0x1513   :  { %v721_v57 = vadd.f32 %v719_v7, %v711_v60 }
0x1515   :  { %1094 = vtanh.f32 %v721_v57 }
0x151f   :  { %v1095_v63 = vpop.eup %1094 }
0x1520   :  { %724 = vrot.lane.b32.xlu0 %v1095_v63, %s1101_s19 }
0x1592   :  { %v725_v1 = vpop.permute.xlu0 %724 }
0x1593   :  { %v727_v3 = vmul.f32 %v725_v1, %v709_v54 }
0x1595   :  { %v728_v4 = vpack.c.bf16 %v727_v3, %v727_v3 }
0x1597   :  { %741 = vrot.lane.b32.xlu1 %v728_v4, %s1102_s3 }
0x1609   :  { %v742_v6 = vpop.permute.xlu1 %741 }
0x160a   :  { %1021 = vmatmul.mubr.msk.bf16.vlgmr.msra.gmra.mrb[20].mxu0 %vm171_vm2, %v742_v6 }
0x16dd   :  { %v792_v13 = vpop.f32.mrb[20].mxu0 }
0x16de   :  { %v793_v2 = vadd.f32 %v899_v12, %v792_v13  ;;  %v1022_v15 = vpop.f32.mrb[21].mxu0 }
0x16df   :  { %v795_v8 = vpop.f32.mrb[22].mxu0 }
0x16e0   :  { %vm799_vm3 = vcmp.ge.f32.partialorder %v793_v2, 0.0  ;;  %v801_v16 = vmul.f32 %v800_v14, %v793_v2  ;;  %v1023_v0 = vpop.f32.mrb[23].mxu0 }
0x16e2   :  { %v802_v5 = vsel %vm799_vm3, %v793_v2, %v801_v16 }
0x16e3   :  { %v803_v17 = vpack.c.bf16 %v802_v5, %v802_v5 }
0x16e5   :  { %1029 = vmatmul.mubr.msk.bf16.vlgmr.msra.gmra.mrb[20].mxu1 %vm171_vm2, %v803_v17 }
0x17b8   :  { %v864_v58 = vpop.f32.mrb[20].mxu1 }
0x17b9   :  { %v865_v19 = vadd.f32 %v903_v18, %v864_v58  ;;  %v1030_v20 = vpop.f32.mrb[21].mxu1 }
0x17ba   :  { %v867_v21 = vpop.f32.mrb[22].mxu1 }
0x17bb   :  { %v870_v22 = vmul.f32 0.5, %v865_v19  ;;  %v1031_v23 = vpop.f32.mrb[23].mxu1 }
0x17bd   :  { %1096 = vtanh.f32 %v870_v22 }
0x17c7   :  { %v1097_v24 = vpop.eup %1096 }
0x17c8   :  { %v872_v25 = vmul.f32 0.5, %v1097_v24 }
0x17ca   :  { %v873_v26 = vadd.f32 0.5, %v872_v25 }
0x17cc   :  { %875 = vst.msk [vmem:[%s1343_s9] sm:$0xff] %vm874_vm4, %v873_v26 }

</bundles_post_ra>
